<compile_context>
chip_gen: v5e
topology: v5e:2x2
jax: 0.10.0
libtpu: 0.0.40
codegen_flags: <defaults>
</compile_context>

<pallas_src>
import math
from functools import partial

import jax
import jax.numpy as jnp
from jax.experimental import pallas as pl
from jax.experimental.pallas import tpu as pltpu


def _round_up(x, m):
    return (x + m - 1) // m * m


def _pe_add_kernel(x_ref, pe_ref, o_ref):
    # x_ref: (tile_s, B, D), pe_ref: (tile_s, 1, D) -> broadcast add over batch.
    o_ref[...] = (x_ref[...] + pe_ref[...]).astype(o_ref.dtype)


def _pe_add_dropout_kernel(x_ref, pe_ref, u_ref, o_ref, *, p):
    # Inverted-scaling dropout: keep iff u >= p, scale kept values by 1/(1-p).
    y = x_ref[...] + pe_ref[...]
    keep = u_ref[...] >= jnp.float32(p)
    scale = jnp.asarray(1.0 / (1.0 - p), dtype=y.dtype)
    o_ref[...] = jnp.where(keep, y * scale, jnp.zeros_like(y)).astype(o_ref.dtype)


def make_positional_encoding(d_model, max_len=5000, dtype=jnp.float32):
    """Same pe buffer as the PyTorch __init__ (shape (max_len, 1, d_model))."""
    position = jnp.arange(max_len, dtype=jnp.float32)[:, None]              # (max_len, 1)
    div_term = jnp.exp(
        jnp.arange(0, d_model, 2, dtype=jnp.float32) * -(math.log(10000.0) / d_model)
    )                                                                        # (d_model//2,)
    angles = position * div_term                                             # (max_len, d_model//2)
    pe = jnp.zeros((max_len, 1, d_model), dtype=jnp.float32)
    pe = pe.at[:, 0, 0::2].set(jnp.sin(angles))
    pe = pe.at[:, 0, 1::2].set(jnp.cos(angles))
    return pe.astype(dtype)


def _choose_tile_s(S, B, D, x_itemsize, pe_itemsize, n_big_blocks, *,
                   vmem_budget_bytes, target_block_bytes):
    """Largest divisor of S whose padded, double-buffered blocks fit the budget."""
    # Mosaic pads the trailing two dims of every VMEM block to multiples of (8, 128).
    xrow = _round_up(B, 8) * _round_up(D, 128) * x_itemsize     # bytes per unit tile_s (x/out/mask)
    perow = 8 * _round_up(D, 128) * pe_itemsize                 # (1, D) row pads to 8 sublanes
    per_s = 2 * (n_big_blocks * xrow + perow)                   # double-buffered working set
    cap = max(1, min(vmem_budget_bytes // per_s,
                     max(1, target_block_bytes // xrow)))
    divisors = [t for t in range(1, S + 1) if S % t == 0 and t <= cap]
    if not divisors:
        return 1
    mult8 = [t for t in divisors if t % 8 == 0]
    return max(mult8) if mult8 else max(divisors)


def positional_encoding_forward(
    x,
    pe,
    *,
    p=0.1,
    training=False,
    rng_key=None,
    tile_s=None,
    donate_x=False,
    vmem_budget_bytes=12 * 1024 * 1024,   # pipeline working-set budget (all gens)
    target_block_bytes=4 * 1024 * 1024,   # per-buffer sweet spot for a mem-bound op
):
    """x: (S, B, D); pe: (max_len, 1, D) full table (window expressed via BlockSpec)."""
    S, B, D = x.shape
    assert pe.ndim == 3 and pe.shape[1] == 1 and pe.shape[2] == D
    assert pe.shape[0] >= S, "sequence longer than positional table"

    use_dropout = bool(training) and float(p) > 0.0
    x_itemsize = jnp.dtype(x.dtype).itemsize
    pe_itemsize = jnp.dtype(pe.dtype).itemsize
    # big blocks that scale with tile_s: x + out (+ dropout mask)
    n_big = 3 if use_dropout else 2

    if tile_s is None:
        tile_s = _choose_tile_s(
            S, B, D, x_itemsize, pe_itemsize, n_big,
            vmem_budget_bytes=vmem_budget_bytes,
            target_block_bytes=target_block_bytes)
    assert S % tile_s == 0, "tile_s must divide S"

    # Check the double-buffered working set against the scoped-VMEM limit we request.
    vmem_limit_bytes = 32 * 1024 * 1024  # <= physical VMEM on v5e/v6e/v7x
    block_bytes = 2 * (
        n_big * tile_s * _round_up(B, 8) * _round_up(D, 128) * x_itemsize
        + tile_s * 8 * _round_up(D, 128) * pe_itemsize)
    assert block_bytes <= vmem_limit_bytes, (
        f"tile_s={tile_s} needs ~{block_bytes} B of VMEM > limit {vmem_limit_bytes} B")

    grid = (S // tile_s,)
    x_spec = pl.BlockSpec((tile_s, B, D), lambda i: (i, 0, 0))
    pe_spec = pl.BlockSpec((tile_s, 1, D), lambda i: (i, 0, 0))  # full table; only rows [0,S) touched

    bytes_accessed = (n_big * S * B * D * x_itemsize) + S * D * pe_itemsize
    cost = pl.CostEstimate(flops=S * B * D, transcendentals=0,
                           bytes_accessed=bytes_accessed)

    compiler_params = pltpu.CompilerParams(
        # No cross-tile carry -> parallel lets v7x shard S-tiles over 2 TCs.
        dimension_semantics=("parallel",),
        vmem_limit_bytes=vmem_limit_bytes,
    )
    io_aliases = ({0: 0} if donate_x else {})

    if use_dropout:
        if rng_key is None:
            rng_key = jax.random.PRNGKey(0)
        u = jax.random.uniform(rng_key, x.shape, dtype=jnp.float32)
        kernel = partial(_pe_add_dropout_kernel, p=float(p))
        return pl.pallas_call(
            kernel,
            out_shape=jax.ShapeDtypeStruct((S, B, D), x.dtype),
            grid=grid,
            in_specs=[x_spec, pe_spec, x_spec],
            out_specs=x_spec,
            compiler_params=compiler_params,
            cost_estimate=cost,
            input_output_aliases=io_aliases,
        )(x, pe, u)

    return pl.pallas_call(
        _pe_add_kernel,
        out_shape=jax.ShapeDtypeStruct((S, B, D), x.dtype),
        grid=grid,
        in_specs=[x_spec, pe_spec],
        out_specs=x_spec,
        compiler_params=compiler_params,
        cost_estimate=cost,
        input_output_aliases=io_aliases,
    )(x, pe)


if __name__ == "__main__":
    key = jax.random.PRNGKey(0)
    k_x, k_drop = jax.random.split(key)
    S, B, D = 8, 2, 32                      # seq=8, batch=2, d_model=32
    x = jax.random.normal(k_x, (S, B, D), dtype=jnp.float32)

    pe = make_positional_encoding(D, max_len=5000)
    ref = x + pe[:S]

    # eval-mode forward (dropout is identity, matching model.eval())
    out = positional_encoding_forward(x, pe, p=0.1, training=False)
    out = jax.block_until_ready(out)
    assert out.shape == (S, B, D) and out.dtype == x.dtype
    assert jnp.allclose(out, ref, atol=1e-6), "mismatch vs reference (eval mode)"

    # training-mode forward: each element is either dropped (0) or scaled by 1/(1-p)
    p_train = 0.5
    out_tr = positional_encoding_forward(x, pe, p=p_train, training=True, rng_key=k_drop)
    out_tr = jax.block_until_ready(out_tr)
    scale = 1.0 / (1.0 - p_train)
    ok = jnp.logical_or(out_tr == 0.0, jnp.isclose(out_tr, ref * scale, atol=1e-5))
    assert bool(jnp.all(ok)), "training-mode dropout output inconsistent with keep/drop semantics"

    # TODO(synk): dropout cannot bit-match torch's RNG stream; it uses a JAX key.
    print("KERNEL_OK")
</pallas_src>

<mosaic_0001>
module attributes {stable_mosaic.version = 11 : i64} {
  func.func @_pe_add_kernel(%arg0: i32, %arg1: memref<8x2x32xf32, #tpu.memory_space<vmem>>, %arg2: memref<8x1x32xf32, #tpu.memory_space<vmem>>, %arg3: memref<8x2x32xf32, #tpu.memory_space<vmem>>) attributes {dimension_semantics = [#tpu.dimension_semantics<parallel>], iteration_bounds = array<i64: 1>, scalar_prefetch = 0 : i64, scratch_operands = 0 : i64, tpu.core_type = #tpu.core_type<tc>, window_params = [{transform_indices = @transform_0, window_bounds = array<i64: 8, 2, 32>}, {transform_indices = @transform_1, window_bounds = array<i64: 8, 1, 32>}, {transform_indices = @transform_2, window_bounds = array<i64: 8, 2, 32>}]} {
    %c0 = arith.constant 0 : index
    %c0_0 = arith.constant 0 : index
    %c0_1 = arith.constant 0 : index
    %0 = vector.load %arg1[%c0, %c0_0, %c0_1] : memref<8x2x32xf32, #tpu.memory_space<vmem>>, vector<8x2x32xf32>
    %c0_2 = arith.constant 0 : index
    %c0_3 = arith.constant 0 : index
    %c0_4 = arith.constant 0 : index
    %1 = vector.load %arg2[%c0_2, %c0_3, %c0_4] : memref<8x1x32xf32, #tpu.memory_space<vmem>>, vector<8x1x32xf32>
    %2 = vector.broadcast %1 : vector<8x1x32xf32> to vector<8x2x32xf32>
    %3 = arith.addf %0, %2 : vector<8x2x32xf32>
    %c0_5 = arith.constant 0 : index
    %c0_6 = arith.constant 0 : index
    %c0_7 = arith.constant 0 : index
    %4 = vector.load %arg3[%c0_5, %c0_6, %c0_7] : memref<8x2x32xf32, #tpu.memory_space<vmem>>, vector<8x2x32xf32>
    tpu.vector_store %arg3[%c0_5, %c0_6, %c0_7], %3 {strides = array<i32>} : memref<8x2x32xf32, #tpu.memory_space<vmem>>, vector<8x2x32xf32>,
    return
  }
  func.func @transform_0(%arg0: i32) -> (i32, i32, i32) {
    %c0_i32 = arith.constant 0 : i32
    %c0_i32_0 = arith.constant 0 : i32
    %c0_i32_1 = arith.constant 0 : i32
    return %arg0, %c0_i32, %c0_i32_0 : i32, i32, i32
  }
  func.func @transform_1(%arg0: i32) -> (i32, i32, i32) {
    %c0_i32 = arith.constant 0 : i32
    %c0_i32_0 = arith.constant 0 : i32
    %c0_i32_1 = arith.constant 0 : i32
    return %arg0, %c0_i32, %c0_i32_0 : i32, i32, i32
  }
  func.func @transform_2(%arg0: i32) -> (i32, i32, i32) {
    %c0_i32 = arith.constant 0 : i32
    %c0_i32_0 = arith.constant 0 : i32
    %c0_i32_1 = arith.constant 0 : i32
    return %arg0, %c0_i32, %c0_i32_0 : i32, i32, i32
  }
}

</mosaic_0001>

<bundles_post_ra>
// kernel: tpu_custom_call.1
= control target key start
LH: loop header
LB: loop body
LE: loop exit
PB: predicated region body
PF: predicated region fallthrough
CT: control target
= control target key end

     0   :  { %vm60_vm0 = vcmask 254976   ;;  %s201_s0 = inlined_call_operand.vmem [shape: f32[8,2,32], index: 0, kind: input, shape index: {}]   ;;  %s202_s1 = inlined_call_operand.vmem [shape: f32[5000,1,32], index: 1, kind: input, shape index: {}]   ;;  %s203_s2 = inlined_call_operand.hbm [shape: f32[8,2,32], index: 2, kind: output, shape index: {}]  }
   0x1   :  { %v12_v0 = vld [vmem:[%s201_s0] sm:$0x3]  ;;  %v13_v2 = vld [vmem:[%s201_s0 + $0x2] sm:$0x3]  ;;  %v14_v5 = vld [vmem:[%s201_s0 + $0x4] sm:$0x3] }
   0x2   :  { %v90_v1 = vld [vmem:[%s202_s1] ss:$0 sm:$0xff]  ;;  %v91_v4 = vld [vmem:[%s202_s1 + $0x1] ss:$0 sm:$0xff]  ;;  %v92_v6 = vld [vmem:[%s202_s1 + $0x2] ss:$0 sm:$0xff] }
   0x3   :  { %v52_v3 = vadd.f32 %v90_v1, %v12_v0  ;;  %v15_v7 = vld [vmem:[%s201_s0 + $0x6] sm:$0x3]  ;;  %v53_v8 = vadd.f32 %v91_v4, %v13_v2  ;;  %v93_v9 = vld [vmem:[%s202_s1 + $0x3] ss:$0 sm:$0xff]  ;;  %v16_v10 = vld [vmem:[%s201_s0 + $0x8] sm:$0x3]  ;;  %v54_v11 = vadd.f32 %v92_v6, %v14_v5 }
   0x4   :  { %v94_v12 = vld [vmem:[%s202_s1 + $0x4] ss:$0 sm:$0xff]  ;;  %v17_v13 = vld [vmem:[%s201_s0 + $0xa] sm:$0x3]  ;;  %v55_v14 = vadd.f32 %v93_v9, %v15_v7  ;;  %v95_v15 = vld [vmem:[%s202_s1 + $0x5] ss:$0 sm:$0xff] }
   0x5   :  { %61 = vst.msk [vmem:[#allocation2] sm:$0x3] %vm60_vm0, %v52_v3  ;;  %v56_v16 = vadd.f32 %v94_v12, %v16_v10  ;;  %v18_v17 = vld [vmem:[%s201_s0 + $0xc] sm:$0x3]  ;;  %v57_v18 = vadd.f32 %v95_v15, %v17_v13  ;;  %v96_v19 = vld [vmem:[%s202_s1 + $0x6] ss:$0 sm:$0xff] }
   0x6   :  { %62 = vst.msk [vmem:[#allocation2 + $0x2] sm:$0x3] %vm60_vm0, %v53_v8  ;;  %v19_v20 = vld [vmem:[%s201_s0 + $0xe] sm:$0x3]  ;;  %v97_v21 = vld [vmem:[%s202_s1 + $0x7] ss:$0 sm:$0xff]  ;;  %v58_v22 = vadd.f32 %v96_v19, %v18_v17 }
   0x7   :  { %63 = vst.msk [vmem:[#allocation2 + $0x4] sm:$0x3] %vm60_vm0, %v54_v11 }
   0x8   :  { %64 = vst.msk [vmem:[#allocation2 + $0x6] sm:$0x3] %vm60_vm0, %v55_v14 }
   0x9   :  { %65 = vst.msk [vmem:[#allocation2 + $0x8] sm:$0x3] %vm60_vm0, %v56_v16 }
   0xa   :  { %66 = vst.msk [vmem:[#allocation2 + $0xa] sm:$0x3] %vm60_vm0, %v57_v18 }
   0xb   :  { %7 = vsyncpa [#allocation3], 0  ;;  %s124_s13 = smov [#allocation2]   ;;  %s75_s17 = sshll.u32 %s203_s2, 4  ;;  %v59_v23 = vadd.f32 %v97_v21, %v19_v20  ;;  %67 = vst.msk [vmem:[#allocation2 + $0xc] sm:$0x3] %vm60_vm0, %v58_v22  ;;  %s76_s17 = int_to_ptr.hbm [resolvable:$true] %s75_s17 }
   0xc   :  { %s73_s14 = sshll.u32 %s124_s13, 4  ;;  %s125_s0 = smov 32   ;;  %s74_s14 = int_to_ptr.vmem [resolvable:$true] %s73_s14 }
   0xd   :  { %68 = vst.msk [vmem:[#allocation2 + $0xe] sm:$0x3] %vm60_vm0, %v59_v23  ;;  %s126_s18 = smov 2  }
   0xe   :  { %81 = dma.vmem_to_hbm [thread:$0]  %s74_s14, 256, %s76_s17, [#allocation3], %s125_s0, %s125_s0, %s126_s18  }
   0xf   :  { %122 = dma.done.wait [#allocation3], 256  }
  0x10   :  { %123 = vsyncadd [#allocation3], 4294967040 }
  0x11   :  { %86 = vsyncpa [#allocation3], 1 }

</bundles_post_ra>
